<compile_context>
chip_gen: v5e
topology: v5e:2x2
jax: 0.10.0
libtpu: 0.0.40
codegen_flags: <defaults>
</compile_context>

<pallas_src>
import jax
import jax.numpy as jnp
from jax.experimental import pallas as pl
from jax.experimental.pallas import tpu as pltpu

# ---- deterministic "config" (synthetic, in-script) --------------------------
FEATURE_VECTOR_LENGTH = 64   # fvl
NUM_CLASSES_PT = 2           # classes_PT
NUM_CLASSES_SC = 2           # classes_SC
# fvl (64) != classes_PT + classes_SC (4) -> the MLP branch is taken.

IN_DIM = FEATURE_VECTOR_LENGTH // 2   # 32
HID_DIM = FEATURE_VECTOR_LENGTH // 4  # 16
OUT_DIM = NUM_CLASSES_PT              # 2

MAX_BATCH_TILE = 2048  # rows per grid step; multiple of 8, small VMEM footprint


def _log_softmax_lastdim(y):
    # numerically-stable log_softmax along the last (lane) axis
    m = jnp.max(y, axis=-1, keepdims=True)
    shifted = y - m
    lse = jnp.log(jnp.sum(jnp.exp(shifted), axis=-1, keepdims=True))
    return shifted - lse


def _linear_logsoftmax_kernel(x_ref, w_ref, b_ref, o_ref):
    # Fused single linear: [TB, IN] @ [IN, OUT] + [1, OUT], then log_softmax.
    y = jnp.dot(x_ref[...], w_ref[...], preferred_element_type=jnp.float32)
    y = y + b_ref[...]
    o_ref[...] = _log_softmax_lastdim(y).astype(o_ref.dtype)


def _logsoftmax_kernel(x_ref, o_ref):
    o_ref[...] = _log_softmax_lastdim(
        x_ref[...].astype(jnp.float32)).astype(o_ref.dtype)


def _batch_tile(B):
    # Full-array block for small batches (block == full dim satisfies the
    # (8,128) rule); otherwise 2048-row (8-aligned) tiles so Pallas can
    # double-buffer / pipeline and v7x can shard across TensorCores.
    return B if B <= MAX_BATCH_TILE else MAX_BATCH_TILE


@jax.jit
def pt_model_forward(x, w1, b1, w2, b2):
    """MLP branch: (fvl != classes_PT + classes_SC)."""
    B = x.shape[0]
    # Fold the two bias-only linear layers into one (no nonlinearity between).
    wc = jnp.dot(w1, w2, preferred_element_type=jnp.float32)        # [IN, OUT]
    bc = jnp.dot(b1, w2, preferred_element_type=jnp.float32) + b2   # [1, OUT]

    tb = _batch_tile(B)
    return pl.pallas_call(
        _linear_logsoftmax_kernel,
        out_shape=jax.ShapeDtypeStruct((B, OUT_DIM), jnp.float32),
        grid=(pl.cdiv(B, tb),),
        in_specs=[
            pl.BlockSpec((tb, IN_DIM), lambda i: (i, 0)),
            pl.BlockSpec((IN_DIM, OUT_DIM), lambda i: (0, 0)),  # VMEM-resident
            pl.BlockSpec((1, OUT_DIM), lambda i: (0, 0)),       # VMEM-resident
        ],
        out_specs=pl.BlockSpec((tb, OUT_DIM), lambda i: (i, 0)),
        compiler_params=pltpu.CompilerParams(
            dimension_semantics=("parallel",)),
    )(x, wc, bc)


@jax.jit
def pt_model_forward_identity_branch(x):
    """Else branch: fvl == classes_PT + classes_SC -> just log_softmax(X, dim=1)."""
    B, F = x.shape
    tb = _batch_tile(B)
    return pl.pallas_call(
        _logsoftmax_kernel,
        out_shape=jax.ShapeDtypeStruct((B, F), jnp.float32),
        grid=(pl.cdiv(B, tb),),
        in_specs=[pl.BlockSpec((tb, F), lambda i: (i, 0))],
        out_specs=pl.BlockSpec((tb, F), lambda i: (i, 0)),
        compiler_params=pltpu.CompilerParams(
            dimension_semantics=("parallel",)),
    )(x)


def init_params(key):
    """Deterministic init mimicking nn.Linear defaults (uniform +/- 1/sqrt(fan_in)).

    Weights are stored as [in, out] (pre-transposed relative to PyTorch's [out, in]).
    """
    k1, k2, k3, k4 = jax.random.split(key, 4)
    bound1 = 1.0 / jnp.sqrt(IN_DIM)
    bound2 = 1.0 / jnp.sqrt(HID_DIM)
    w1 = jax.random.uniform(k1, (IN_DIM, HID_DIM), jnp.float32, -bound1, bound1)
    b1 = jax.random.uniform(k2, (1, HID_DIM), jnp.float32, -bound1, bound1)
    w2 = jax.random.uniform(k3, (HID_DIM, OUT_DIM), jnp.float32, -bound2, bound2)
    b2 = jax.random.uniform(k4, (1, OUT_DIM), jnp.float32, -bound2, bound2)
    return w1, b1, w2, b2


if __name__ == "__main__":
    key = jax.random.PRNGKey(0)
    kx, kp = jax.random.split(key)

    B = 2
    x = jax.random.normal(kx, (B, IN_DIM), jnp.float32)  # [2, 32]
    w1, b1, w2, b2 = init_params(kp)

    # Python-level branch selection (mirrors the PyTorch `if` on config constants)
    if FEATURE_VECTOR_LENGTH != NUM_CLASSES_PT + NUM_CLASSES_SC:
        out = pt_model_forward(x, w1, b1, w2, b2)
    else:
        out = pt_model_forward_identity_branch(x)
    out = jax.block_until_ready(out)

    # reference check in plain JAX (unfused two-layer form)
    ref = jax.nn.log_softmax((x @ w1 + b1) @ w2 + b2, axis=1)
    assert out.shape == (B, OUT_DIM)
    assert jnp.allclose(out, ref, atol=1e-4), (out, ref)
    # log_softmax rows should sum (in prob space) to ~1
    assert jnp.allclose(jnp.sum(jnp.exp(out), axis=1), 1.0, atol=1e-5)

    print("KERNEL_OK")
</pallas_src>

<mosaic_0001>
module attributes {stable_mosaic.version = 11 : i64} {
  func.func @_linear_logsoftmax_kernel(%arg0: i32, %arg1: memref<2x32xf32, #tpu.memory_space<vmem>>, %arg2: memref<32x2xf32, #tpu.memory_space<vmem>>, %arg3: memref<1x2xf32, #tpu.memory_space<vmem>>, %arg4: memref<2x2xf32, #tpu.memory_space<vmem>>) attributes {dimension_semantics = [#tpu.dimension_semantics<parallel>], iteration_bounds = array<i64: 1>, scalar_prefetch = 0 : i64, scratch_operands = 0 : i64, tpu.core_type = #tpu.core_type<tc>, window_params = [{transform_indices = @transform_0, window_bounds = array<i64: 2, 32>}, {pipeline_mode = #tpu.pipeline_mode<synchronous>, transform_indices = @transform_1, window_bounds = array<i64: 32, 2>}, {pipeline_mode = #tpu.pipeline_mode<synchronous>, transform_indices = @transform_2, window_bounds = array<i64: 1, 2>}, {transform_indices = @transform_3, window_bounds = array<i64: 2, 2>}]} {
    %c0 = arith.constant 0 : index
    %c0_0 = arith.constant 0 : index
    %0 = vector.load %arg1[%c0, %c0_0] : memref<2x32xf32, #tpu.memory_space<vmem>>, vector<2x32xf32>
    %c0_1 = arith.constant 0 : index
    %c0_2 = arith.constant 0 : index
    %1 = vector.load %arg2[%c0_1, %c0_2] : memref<32x2xf32, #tpu.memory_space<vmem>>, vector<32x2xf32>
    %cst = arith.constant dense<0.000000e+00> : vector<2x2xf32>
    %2 = tpu.matmul %0, %1, %cst {dimension_numbers = #tpu.dot_dimension_numbers<[1], [0], [0], [1], [0, 0, 1, 1], [], []>} : vector<2x32xf32>, vector<32x2xf32>, vector<2x2xf32> -> vector<2x2xf32>
    %c0_3 = arith.constant 0 : index
    %c0_4 = arith.constant 0 : index
    %3 = vector.load %arg3[%c0_3, %c0_4] : memref<1x2xf32, #tpu.memory_space<vmem>>, vector<1x2xf32>
    %4 = vector.broadcast %3 : vector<1x2xf32> to vector<2x2xf32>
    %5 = arith.addf %2, %4 : vector<2x2xf32>
    %cst_5 = arith.constant dense<0xFF800000> : vector<2xf32>
    %6 = vector.multi_reduction <maximumf>, %5, %cst_5 [1] : vector<2x2xf32> to vector<2xf32>
    %7 = vector.shape_cast %6 : vector<2xf32> to vector<2x1xf32>
    %8 = vector.broadcast %7 : vector<2x1xf32> to vector<2x2xf32>
    %9 = arith.subf %5, %8 : vector<2x2xf32>
    %10 = math.exp %9 : vector<2x2xf32>
    %cst_6 = arith.constant dense<0.000000e+00> : vector<2xf32>
    %11 = vector.multi_reduction <add>, %10, %cst_6 [1] : vector<2x2xf32> to vector<2xf32>
    %12 = vector.shape_cast %11 : vector<2xf32> to vector<2x1xf32>
    %13 = math.log %12 : vector<2x1xf32>
    %14 = vector.broadcast %13 : vector<2x1xf32> to vector<2x2xf32>
    %15 = arith.subf %9, %14 : vector<2x2xf32>
    %c0_7 = arith.constant 0 : index
    %c0_8 = arith.constant 0 : index
    %16 = vector.load %arg4[%c0_7, %c0_8] : memref<2x2xf32, #tpu.memory_space<vmem>>, vector<2x2xf32>
    tpu.vector_store %arg4[%c0_7, %c0_8], %15 {strides = array<i32>} : memref<2x2xf32, #tpu.memory_space<vmem>>, vector<2x2xf32>,
    return
  }
  func.func @transform_0(%arg0: i32) -> (i32, i32) {
    %c0_i32 = arith.constant 0 : i32
    %c0_i32_0 = arith.constant 0 : i32
    return %arg0, %c0_i32 : i32, i32
  }
  func.func @transform_1(%arg0: i32) -> (i32, i32) {
    %c0_i32 = arith.constant 0 : i32
    %c0_i32_0 = arith.constant 0 : i32
    %c0_i32_1 = arith.constant 0 : i32
    return %c0_i32, %c0_i32_0 : i32, i32
  }
  func.func @transform_2(%arg0: i32) -> (i32, i32) {
    %c0_i32 = arith.constant 0 : i32
    %c0_i32_0 = arith.constant 0 : i32
    %c0_i32_1 = arith.constant 0 : i32
    return %c0_i32, %c0_i32_0 : i32, i32
  }
  func.func @transform_3(%arg0: i32) -> (i32, i32) {
    %c0_i32 = arith.constant 0 : i32
    %c0_i32_0 = arith.constant 0 : i32
    return %arg0, %c0_i32 : i32, i32
  }
}

</mosaic_0001>

<bundles_post_ra>
// kernel: pt_model_forward.1
= control target key start
LH: loop header
LB: loop body
LE: loop exit
PB: predicated region body
PF: predicated region fallthrough
CT: control target
= control target key end

     0   :  { %s156_s0 = inlined_call_operand.vmem [shape: f32[2,32], index: 0, kind: input, shape index: {}]   ;;  %s157_s1 = inlined_call_operand.vmem [shape: f32[32,2], index: 1, kind: input, shape index: {}]   ;;  %s158_s2 = inlined_call_operand.vmem [shape: f32[1,2], index: 2, kind: input, shape index: {}]   ;;  %s159_s3 = inlined_call_operand.hbm [shape: f32[2,2], index: 3, kind: output, shape index: {}]  }
   0x1   :  { %v19_v0 = vld [vmem:[%s157_s1 + $0x18] sm:$0xff]  ;;  %v18_v1 = vld [vmem:[%s157_s1 + $0x10] sm:$0xff]  ;;  %v17_v2 = vld [vmem:[%s157_s1 + $0x8] sm:$0xff] }
   0x2   :  { %40 = vmatpush.msra.mxu0 %v19_v0 }
   0x3   :  { %8 = vsyncpa [#allocation3], 0  ;;  %v16_v3 = vld [vmem:[%s157_s1] sm:$0xff]  ;;  %vm24_vm0 = vcmask 261120   ;;  %vm48_vm1 = vcmask 9216   ;;  %s69_s25 = sshll.u32 %s159_s3, 4  ;;  %s70_s25 = int_to_ptr.hbm [resolvable:$true] %s69_s25 }
   0x4   :  { %41 = vmatpush.msra.mxu0 %v18_v1  ;;  %v15_v4 = vld [vmem:[%s156_s0] sm:$0x3]  ;;  %s111_s0 = smov [#allocation2]  }
   0x5   :  { %v80_v5 = vld [vmem:[%s158_s2] ss:$0 sm:$0xff]  ;;  %s67_s1 = sshll.u32 %s111_s0, 4  ;;  %s68_s1 = int_to_ptr.vmem [resolvable:$true] %s67_s1 }
   0x6   :  { %42 = vmatpush.msra.mxu0 %v17_v2 }
   0x8   :  { %43 = vmatpush.msra.mxu0 %v16_v3 }
   0x9   :  { %78 = vmatmul.msk.f32.vlgmr.msra.gmra.mxu0 %vm24_vm0, %v15_v4 }
  0x86   :  { %v45_v6 = vpop.f32.mrf.mxu0 }
  0x87   :  { %v46_v7 = vadd.f32 %v80_v5, %v45_v6 }
  0x89   :  { %v49_v8 = vsel %vm48_vm1, %v46_v7, -inf }
  0x8a   :  { %50 = vmax.xlane.f32.xlu0 %v49_v8 }
  0xfd   :  { %v51_v9 = vpop.xlane.xlu0 %50 }
  0xfe   :  { %v52_v10 = vsub.f32 %v46_v7, %v51_v9 }
 0x100   :  { %v53_v11 = vmul.f32 1.442695, %v52_v10 }
 0x102   :  { %81 = vpow2.f32 %v53_v11 }
 0x108   :  { %v82_v12 = vpop.eup %81 }
 0x109   :  { %v55_v13 = vsel %vm48_vm1, %v82_v12, 0.0 }
 0x10a   :  { %56 = vadd.xlane.f32.xlu0 %v55_v13 }
 0x17d   :  { %v57_v14 = vpop.xlane.xlu0 %56 }
 0x17e   :  { %83 = vlog2.f32 %v57_v14 }
 0x184   :  { %v84_v15 = vpop.eup %83 }
 0x185   :  { %v59_v16 = vmul.f32 0.6931472, %v84_v15 }
 0x187   :  { %v60_v17 = vsub.f32 %v52_v10, %v59_v16 }
 0x189   :  { %61 = vst.msk [vmem:[#allocation2] sm:$0x3] %vm48_vm1, %v60_v17 }
 0x18a   :  { %72 = dma.vmem_to_hbm [thread:$0]  %s68_s1, 32, %s70_s25, [#allocation3]  }
 0x18b   :  { %109 = dma.done.wait [#allocation3], 32  }
 0x18c   :  { %110 = vsyncadd [#allocation3], 4294967264 }
 0x18d   :  { %77 = vsyncpa [#allocation3], 1 }

</bundles_post_ra>
